<compile_context>
chip_gen: v7x
topology: tpu7x:2x2x1
jax: 0.10.0
libtpu: 0.0.40
codegen_flags: <defaults>
</compile_context>

<pallas_src>
import functools

import jax
import jax.numpy as jnp
from jax.experimental import pallas as pl
from jax.experimental.pallas import tpu as pltpu

_EPS = 1e-5  # BatchNorm1d default eps


# ------------------------------ tiling helpers ---------------------------------
def _vmem_limit_bytes():
    """Scoped-VMEM budget derived from the actual chip (v7x: 64 MiB, v5e/v6e: 128)."""
    try:
        cap = pltpu.get_tpu_info().vmem_capacity_bytes
    except Exception:  # interpret mode / no TPU info available
        cap = 64 << 20
    return int(min(cap * 3 // 4, 96 << 20))


def _pick_tile_rows(n_rows, bytes_per_row, vmem_limit, cap=None):
    """Largest row tile (multiple of 8) whose double-buffered working set fits
    ~half the scoped-VMEM budget.  No artificial cap: big tiles amortize the
    ~0.35us per-grid-step overhead (measured 29%->85% of HBM roofline as the
    per-step tile grows)."""
    rows = (vmem_limit // 2) // max(bytes_per_row, 1)
    if cap is not None:
        rows = min(rows, cap)
    rows = max(8, rows - rows % 8)
    if rows >= n_rows:
        return max(int(n_rows), 1)     # single block covering the full array
    return int(rows)


def _block_diag(w, p):
    """(K, C) -> block-diagonal (p*K, p*C): packed rows get their own gamma/beta."""
    if p == 1:
        return w
    k, c = w.shape
    eye = jnp.eye(p, dtype=w.dtype)
    return (eye[:, None, :, None] * w[None, :, None, :]).reshape(p * k, p * c)


# ----------------------------- Pass 1: batch stats -----------------------------
def _stats_kernel(x_ref, sum_ref, sq_ref, *, n_rows, tile_rows, tiles_per_core):
    """Accumulate per-lane-column sum / sum-of-squares over the reduction axis.

    Grid = (cores, tiles_per_core): leading axis is "parallel" (megacore shard
    on v7x), trailing axis is the sequential reduction.  Tail rows of the last
    partial block are masked, so x never needs a padded HBM copy."""
    j = pl.program_id(1)

    @pl.when(j == 0)
    def _():
        sum_ref[...] = jnp.zeros_like(sum_ref)
        sq_ref[...] = jnp.zeros_like(sq_ref)

    block = pl.program_id(0) * tiles_per_core + j
    rows_left = n_rows - block * tile_rows            # scalar; < tile_rows on tail
    row_ids = jax.lax.broadcasted_iota(jnp.int32, x_ref.shape, 0)
    x = jnp.where(row_ids < rows_left, x_ref[...], 0.0)
    sum_ref[...] += jnp.sum(x, axis=0, keepdims=True)[None]
    sq_ref[...] += jnp.sum(x * x, axis=0, keepdims=True)[None]


# ----------------------- Pass 2: normalize + modulate --------------------------
def _norm_kernel(x_ref, cin_ref, scale_ref, shift_ref, w_ref, b_ref, out_ref):
    """out = gamma * (x*scale + shift) + beta.

    gamma|beta come from ONE fused (tile, 2*PC)-wide MXU matmul against the
    packed block-diagonal weight (halves MXU pushes / weight loads per step)."""
    xn = x_ref[...] * scale_ref[...] + shift_ref[...]               # (T, PC) f32
    gb = jnp.dot(cin_ref[...], w_ref[...],
                 preferred_element_type=jnp.float32) + b_ref[...]   # (T, 2*PC)
    pc = out_ref.shape[-1]
    out_ref[...] = gb[:, :pc] * xn + gb[:, pc:]


# --------------------------------- wrapper --------------------------------------
def conditional_norm(x, em_label, con2, params, *, cond_dtype=jnp.float32,
                     max_rows_per_tile=None):
    """x: (N, C) f32, em_label: (N, n_class) f32, con2: (N, 40) f32 -> (N, C) f32."""
    N, C = x.shape
    n_class = em_label.shape[1]
    K = n_class + 40

    fc_w, fc_b = params["fc_w"], params["fc_b"]
    embed_w, embed_b = params["embed_w"], params["embed_b"]
    bn_w, bn_b = params["bn_w"], params["bn_b"]

    # --- glue: fold fc + concat + embed + chunk into (K, C) matmuls + biases ---
    fcw_t = fc_w.T                                     # (n_class, 20)
    gw1, gw2 = embed_w[:C, :20].T, embed_w[:C, 20:].T  # (20, C), (40, C)
    bw1, bw2 = embed_w[C:, :20].T, embed_w[C:, 20:].T
    wg = jnp.concatenate([fcw_t @ gw1, gw2], axis=0)   # (K, C)
    wb = jnp.concatenate([fcw_t @ bw1, bw2], axis=0)   # (K, C)
    bg = fc_b @ gw1 + embed_b[:C]                      # (C,)
    bb = fc_b @ bw1 + embed_b[C:]                      # (C,)
    cin = jnp.concatenate([em_label, con2], axis=1)    # (N, K)

    # --- lane-dense row packing: P rows per 128-lane vreg row (C=32 -> P=4) ---
    P = 128 // C if (C < 128 and 128 % C == 0) else 1
    Np = ((N + P - 1) // P) * P
    if Np != N:
        # Only copy ever made: at most P-1 zero rows so the packed reshape exists.
        x = jnp.pad(x, ((0, Np - N), (0, 0)))
        cin = jnp.pad(cin, ((0, Np - N), (0, 0)))
    n_rows = Np // P                                   # packed rows
    PC, PK = P * C, P * K
    xp = x.reshape(n_rows, PC)                         # layout plumbing only
    cinp = cin.reshape(n_rows, PK).astype(cond_dtype)

    # fused + packed modulation weights: one (PK, 2*PC) matmul per tile
    w_full = jnp.concatenate([_block_diag(wg, P), _block_diag(wb, P)],
                             axis=1).astype(cond_dtype)              # (PK, 2*PC)
    b_full = jnp.concatenate([jnp.tile(bg, P), jnp.tile(bb, P)])[None, :]  # (1, 2*PC)

    vmem_limit = _vmem_limit_bytes()
    cond_bytes = jnp.dtype(cond_dtype).itemsize
    bytes_per_row = 2 * (4 * PC + 4 * PC + cond_bytes * PK)   # dbl-buffered x+out+cin
    tile_rows = _pick_tile_rows(n_rows, bytes_per_row, vmem_limit, max_rows_per_tile)
    tiles = pl.cdiv(n_rows, tile_rows)

    # ---- pass 1: per-channel batch sum / sum-of-squares (reduction over N) ----
    # 2-way "parallel" leading axis -> megacore-sharded reduction on v7x (plain
    # serial loop on v5e/v6e).  Only used when it divides the tile count evenly
    # so every grid point maps to an in-range block; odd tile counts fall back
    # to a single core.
    n_par = 2 if (tiles % 2 == 0 and tiles >= 2) else 1
    tiles_per_core = tiles // n_par

    stat_shape = jax.ShapeDtypeStruct((n_par, 1, PC), jnp.float32)
    stat_spec = pl.BlockSpec((1, 1, PC), lambda i, j: (i, 0, 0))
    sum_p, sq_p = pl.pallas_call(
        functools.partial(_stats_kernel, n_rows=n_rows, tile_rows=tile_rows,
                          tiles_per_core=tiles_per_core),
        out_shape=(stat_shape, stat_shape),
        grid=(n_par, tiles_per_core),
        in_specs=[pl.BlockSpec((tile_rows, PC),
                               lambda i, j: (i * tiles_per_core + j, 0))],
        out_specs=(stat_spec, stat_spec),
        compiler_params=pltpu.CompilerParams(
            dimension_semantics=("parallel", "arbitrary"),
            vmem_limit_bytes=vmem_limit),
    )(xp)

    # tiny (C,)-sized glue: reduce partials, fold BN stats + affine into scale/shift
    sum_x = sum_p.reshape(n_par * P, C).sum(0)
    sum_x2 = sq_p.reshape(n_par * P, C).sum(0)
    mean = sum_x / N                                   # true N (zero pad rows inert)
    var = jnp.maximum(sum_x2 / N - mean * mean, 0.0)   # clamp f32 cancellation
    scale = bn_w * jax.lax.rsqrt(var + _EPS)           # (C,)
    shift = bn_b - mean * scale
    scale_p = jnp.tile(scale, P)[None, :]              # (1, PC)
    shift_p = jnp.tile(shift, P)[None, :]

    # ---- pass 2: normalize + conditional modulation, parallel over row tiles ----
    # Tail rows of the last partial block read unspecified data and their
    # writes are discarded by the pipeline (no padded copy of x / cin needed).
    const = lambda shape: pl.BlockSpec(shape, lambda i: (0,) * len(shape))
    row_spec = pl.BlockSpec((tile_rows, PC), lambda i: (i, 0))
    out_p = pl.pallas_call(
        _norm_kernel,
        out_shape=jax.ShapeDtypeStruct((n_rows, PC), jnp.float32),
        grid=(tiles,),
        in_specs=[row_spec,                                      # x (packed)
                  pl.BlockSpec((tile_rows, PK), lambda i: (i, 0)),  # cin (packed)
                  const((1, PC)), const((1, PC)),                # scale, shift
                  const((PK, 2 * PC)), const((1, 2 * PC))],      # W, bias (resident)
        out_specs=row_spec,
        compiler_params=pltpu.CompilerParams(
            dimension_semantics=("parallel",),                   # megacore on v7x
            vmem_limit_bytes=vmem_limit),
    )(xp, cinp, scale_p, shift_p, w_full, b_full)

    return out_p.reshape(Np, C)[:N]


# ------------------------------- glue helpers ----------------------------------
def truncated_normal(key, a, b, mean=0.0, std=1.0):
    """JAX replica of the reference Truncated_normal (RNG glue, not hot path)."""
    tmp = jax.random.normal(key, (a, b, 4), dtype=jnp.float32)
    valid = (tmp < 2.5) & (tmp > -2.5)
    ind = jnp.argmax(valid, axis=-1)       # first valid sample, like torch max(-1)[1]
    out = jnp.take_along_axis(tmp, ind[..., None], axis=-1)[..., 0]
    return out * std + mean


def init_params(key, in_channel, n_class):
    k1, k2, k3 = jax.random.split(key, 3)
    C = in_channel
    # fc = Linear(n_class, 20)
    bound_fc = 1.0 / jnp.sqrt(n_class)
    fc_w = jax.random.uniform(k1, (20, n_class), jnp.float32, -bound_fc, bound_fc)
    fc_b = jax.random.uniform(k2, (20,), jnp.float32, -bound_fc, bound_fc)
    # embed = Linear(60, 2C); weight overwritten: first C input cols = 1, rest = 0
    embed_w = jnp.concatenate(
        [jnp.ones((2 * C, C), jnp.float32), jnp.zeros((2 * C, 60 - C), jnp.float32)],
        axis=1)
    bound_em = 1.0 / jnp.sqrt(60.0)
    embed_b = jax.random.uniform(k3, (2 * C,), jnp.float32, -bound_em, bound_em)
    # BatchNorm1d(in_channel) default affine params
    bn_w = jnp.ones((C,), jnp.float32)
    bn_b = jnp.zeros((C,), jnp.float32)
    return dict(fc_w=fc_w, fc_b=fc_b, embed_w=embed_w, embed_b=embed_b,
                bn_w=bn_w, bn_b=bn_b)


def _reference(x, em_label, con2, params, C):
    """Pure-JAX transcript of the PyTorch forward (training-mode BN)."""
    mean = x.mean(0, keepdims=True)
    var = ((x - mean) ** 2).mean(0, keepdims=True)
    xn = (x - mean) / jnp.sqrt(var + _EPS) * params["bn_w"] + params["bn_b"]
    con1 = em_label @ params["fc_w"].T + params["fc_b"]
    con = jnp.concatenate([con1, con2], axis=1)
    embed = con @ params["embed_w"].T + params["embed_b"]
    return embed[:, :C] * xn + embed[:, C:]


if __name__ == "__main__":
    key = jax.random.PRNGKey(0)

    # ---- test A: module-sized shapes, f32 conditioning path -------------------
    N, C, n_class = 8, 32, 10   # in_channel <= 60 so the embed weight init is meaningful
    kx, kl, kp, kt, krest = jax.random.split(key, 5)
    x = jax.random.normal(kx, (N, C), dtype=jnp.float32)
    em_label = jax.random.normal(kl, (N, n_class), dtype=jnp.float32)
    params = init_params(kp, C, n_class)
    con2 = truncated_normal(kt, N, 40)

    out = jax.block_until_ready(conditional_norm(x, em_label, con2, params))
    assert out.shape == (N, C) and out.dtype == jnp.float32
    ref = _reference(x, em_label, con2, params, C)
    assert jnp.allclose(out, ref, atol=1e-4, rtol=1e-4)

    # ---- test B: multi-tile grid, megacore split, partial tail block ----------
    N2 = 100
    kx2, kl2, kt2 = jax.random.split(krest, 3)
    x2 = jax.random.normal(kx2, (N2, C), dtype=jnp.float32)
    em2 = jax.random.normal(kl2, (N2, n_class), dtype=jnp.float32)
    con2b = truncated_normal(kt2, N2, 40)
    out2 = jax.block_until_ready(
        conditional_norm(x2, em2, con2b, params, max_rows_per_tile=8))
    ref2 = _reference(x2, em2, con2b, params, C)
    assert jnp.allclose(out2, ref2, atol=1e-4, rtol=1e-4)

    # ---- test C: bf16 conditioning inputs / weights (halves cin HBM traffic) --
    out3 = jax.block_until_ready(
        conditional_norm(x2, em2, con2b, params, cond_dtype=jnp.bfloat16))
    rel = jnp.max(jnp.abs(out3 - ref2)) / (jnp.max(jnp.abs(ref2)) + 1e-6)
    assert rel < 0.03

    print("KERNEL_OK")
</pallas_src>

<mosaic_0001>
module attributes {stable_mosaic.version = 11 : i64} {
  func.func @_stats_kernel(%arg0: i32, %arg1: i32, %arg2: memref<2x128xf32, #tpu.memory_space<vmem>>, %arg3: memref<1x1x128xf32, #tpu.memory_space<vmem>>, %arg4: memref<1x1x128xf32, #tpu.memory_space<vmem>>) attributes {dimension_semantics = [#tpu.dimension_semantics<parallel>, #tpu.dimension_semantics<arbitrary>], iteration_bounds = array<i64: 1, 1>, scalar_prefetch = 0 : i64, scratch_operands = 0 : i64, tpu.core_type = #tpu.core_type<tc>, window_params = [{transform_indices = @transform_0, window_bounds = array<i64: 2, 128>}, {transform_indices = @transform_1, window_bounds = array<i64: 1, 1, 128>}, {transform_indices = @transform_2, window_bounds = array<i64: 1, 1, 128>}]} {
    %c0_i32 = arith.constant 0 : i32
    %0 = arith.cmpi eq, %arg1, %c0_i32 : i32
    %1 = arith.extui %0 : i1 to i32
    %c0_i32_0 = arith.constant 0 : i32
    %2 = arith.cmpi ne, %1, %c0_i32_0 : i32
    scf.if %2 {
      %cst_17 = arith.constant 0.000000e+00 : f32
      %26 = vector.broadcast %cst_17 : f32 to vector<1x1x128xf32>
      %c0_18 = arith.constant 0 : index
      %c0_19 = arith.constant 0 : index
      %c0_20 = arith.constant 0 : index
      %27 = vector.load %arg3[%c0_18, %c0_19, %c0_20] : memref<1x1x128xf32, #tpu.memory_space<vmem>>, vector<1x1x128xf32>
      tpu.vector_store %arg3[%c0_18, %c0_19, %c0_20], %26 {strides = array<i32>} : memref<1x1x128xf32, #tpu.memory_space<vmem>>, vector<1x1x128xf32>,
      %cst_21 = arith.constant 0.000000e+00 : f32
      %28 = vector.broadcast %cst_21 : f32 to vector<1x1x128xf32>
      %c0_22 = arith.constant 0 : index
      %c0_23 = arith.constant 0 : index
      %c0_24 = arith.constant 0 : index
      %29 = vector.load %arg4[%c0_22, %c0_23, %c0_24] : memref<1x1x128xf32, #tpu.memory_space<vmem>>, vector<1x1x128xf32>
      tpu.vector_store %arg4[%c0_22, %c0_23, %c0_24], %28 {strides = array<i32>} : memref<1x1x128xf32, #tpu.memory_space<vmem>>, vector<1x1x128xf32>,
    } else {
    }
    %c1_i32 = arith.constant 1 : i32
    %3 = arith.muli %arg0, %c1_i32 : i32
    %4 = arith.addi %3, %arg1 : i32
    %c2_i32 = arith.constant 2 : i32
    %5 = arith.muli %4, %c2_i32 : i32
    %c2_i32_1 = arith.constant 2 : i32
    %6 = arith.subi %c2_i32_1, %5 : i32
    %7 = tpu.iota {dimensions = array<i32: 0>} : vector<2x128xi32>
    %8 = vector.broadcast %6 : i32 to vector<2x128xi32>
    %9 = arith.cmpi slt, %7, %8 : vector<2x128xi32>
    %c0 = arith.constant 0 : index
    %c0_2 = arith.constant 0 : index
    %10 = vector.load %arg2[%c0, %c0_2] : memref<2x128xf32, #tpu.memory_space<vmem>>, vector<2x128xf32>
    %cst = arith.constant 0.000000e+00 : f32
    %11 = vector.broadcast %cst : f32 to vector<2x128xf32>
    %12 = arith.select %9, %10, %11 : vector<2x128xi1>, vector<2x128xf32>
    %c0_3 = arith.constant 0 : index
    %c0_4 = arith.constant 0 : index
    %c0_5 = arith.constant 0 : index
    %13 = vector.load %arg3[%c0_3, %c0_4, %c0_5] : memref<1x1x128xf32, #tpu.memory_space<vmem>>, vector<1x1x128xf32>
    %cst_6 = arith.constant dense<0.000000e+00> : vector<128xf32>
    %14 = vector.multi_reduction <add>, %12, %cst_6 [0] : vector<2x128xf32> to vector<128xf32>
    %15 = vector.shape_cast %14 : vector<128xf32> to vector<1x128xf32>
    %16 = vector.shape_cast %15 : vector<1x128xf32> to vector<1x1x128xf32>
    %17 = arith.addf %13, %16 : vector<1x1x128xf32>
    %c0_7 = arith.constant 0 : index
    %c0_8 = arith.constant 0 : index
    %c0_9 = arith.constant 0 : index
    %18 = vector.load %arg3[%c0_7, %c0_8, %c0_9] : memref<1x1x128xf32, #tpu.memory_space<vmem>>, vector<1x1x128xf32>
    tpu.vector_store %arg3[%c0_7, %c0_8, %c0_9], %17 {strides = array<i32>} : memref<1x1x128xf32, #tpu.memory_space<vmem>>, vector<1x1x128xf32>,
    %c0_10 = arith.constant 0 : index
    %c0_11 = arith.constant 0 : index
    %c0_12 = arith.constant 0 : index
    %19 = vector.load %arg4[%c0_10, %c0_11, %c0_12] : memref<1x1x128xf32, #tpu.memory_space<vmem>>, vector<1x1x128xf32>
    %20 = arith.mulf %12, %12 : vector<2x128xf32>
    %cst_13 = arith.constant dense<0.000000e+00> : vector<128xf32>
    %21 = vector.multi_reduction <add>, %20, %cst_13 [0] : vector<2x128xf32> to vector<128xf32>
    %22 = vector.shape_cast %21 : vector<128xf32> to vector<1x128xf32>
    %23 = vector.shape_cast %22 : vector<1x128xf32> to vector<1x1x128xf32>
    %24 = arith.addf %19, %23 : vector<1x1x128xf32>
    %c0_14 = arith.constant 0 : index
    %c0_15 = arith.constant 0 : index
    %c0_16 = arith.constant 0 : index
    %25 = vector.load %arg4[%c0_14, %c0_15, %c0_16] : memref<1x1x128xf32, #tpu.memory_space<vmem>>, vector<1x1x128xf32>
    tpu.vector_store %arg4[%c0_14, %c0_15, %c0_16], %24 {strides = array<i32>} : memref<1x1x128xf32, #tpu.memory_space<vmem>>, vector<1x1x128xf32>,
    return
  }
  func.func @transform_0(%arg0: i32, %arg1: i32) -> (i32, i32) {
    %c1_i32 = arith.constant 1 : i32
    %0 = arith.muli %arg0, %c1_i32 : i32
    %1 = arith.addi %0, %arg1 : i32
    %c0_i32 = arith.constant 0 : i32
    %c0_i32_0 = arith.constant 0 : i32
    return %1, %c0_i32 : i32, i32
  }
  func.func @transform_1(%arg0: i32, %arg1: i32) -> (i32, i32, i32) {
    %c0_i32 = arith.constant 0 : i32
    %c0_i32_0 = arith.constant 0 : i32
    %c0_i32_1 = arith.constant 0 : i32
    return %arg0, %c0_i32, %c0_i32_0 : i32, i32, i32
  }
  func.func @transform_2(%arg0: i32, %arg1: i32) -> (i32, i32, i32) {
    %c0_i32 = arith.constant 0 : i32
    %c0_i32_0 = arith.constant 0 : i32
    %c0_i32_1 = arith.constant 0 : i32
    return %arg0, %c0_i32, %c0_i32_0 : i32, i32, i32
  }
}

</mosaic_0001>

<bundles_post_ra>
// kernel: tpu_custom_call.1
= control target key start
LH: loop header
LB: loop body
LE: loop exit
PB: predicated region body
PF: predicated region fallthrough
CT: control target
= control target key end

     0   :  { %8 = vsyncpa [#allocation3], 0  ;;  %s234_s0 = inlined_call_operand.hbm [shape: f32[2,128], index: 0, kind: input, shape index: {}]   ;;  %s235_s1 = inlined_call_operand.hbm [shape: f32[1,1,128], index: 1, kind: output, shape index: {0}]   ;;  %s236_s2 = inlined_call_operand.hbm [shape: f32[1,1,128], index: 2, kind: output, shape index: {1}]  }
   0x1   :  { %9 = vsyncpa [#allocation4], 0 }
   0x2   :  { %10 = vsyncpa [#allocation7], 0  ;;  %s171_s9 = smov [#allocation2]   ;;  %s99_s13 = scalar_lea.hbm %s234_s0, 32 }
   0x3   :  { %s20_s10 = sshll.u32 %s171_s9, 4  ;;  %p100_p0 = scmp.ne.s32.totalorder %s234_s0, %s99_s13  ;;  %s21_s10 = int_to_ptr.vmem [resolvable:$true] %s20_s10 }
   0x4   :  { %p103_p1 = scmp.lt.u32.totalorder %s99_s13, %s234_s0 }
   0x6   :  { %p105_p2 = pnand %p103_p1, %p100_p0 }
   0x8   :  { %108 = shalt.err (!%p105_p2)
}
   0x9   :  { %s109_s18 = scalar_lea.vmem %s21_s10, 32  ;;  %p114_p4 = scmp.lt.s32.totalorder %s21_s10, %s21_s10 }
   0xa   :  { %p110_p3 = scmp.ne.s32.totalorder %s21_s10, %s109_s18  ;;  %p115_p5 = scmp.lt.s32.totalorder %s109_s18, %s109_s18 }
   0xc   :  { %p116_p6 = por %p115_p5, %p114_p4 }
   0xe   :  { %p117_p7 = pnand %p116_p6, %p110_p3 }
  0x10   :  { %120 = shalt.err (!%p117_p7)
}
  0x11   :  { %23 = dma.hbm_to_vmem [thread:$0]  %s234_s0, 32, %s21_s10, [#allocation3]  }
  0x12   :  { %165 = dma.done.wait [#allocation3], 32  }
  0x13   :  { %166 = vsyncadd [#allocation3], 4294967264  ;;  %v172_v0 = vmov 0.0   ;;  %vm44_vm0 = vcmask 1041408   ;;  %v94_v1 = vld [vmem:[#allocation2] sm:$0x3] }
  0x14   :  { %32 = vst [vmem:[#allocation5] sm:$0x1] %v172_v0  ;;  %33 = vst [vmem:[#allocation6] sm:$0x1] %v172_v0  ;;  %v45_v2 = vsel %vm44_vm0, %v94_v1, 0.0  ;;  %v55_v3 = vmul.f32 %v94_v1, %v94_v1  ;;  %s173_s0 = smov [#allocation5]  }
  0x15   :  { %v46_v4 = vrot.slane %v45_v2, 4  ;;  %s71_s21 = sshll.u32 %s173_s0, 4  ;;  %s174_s22 = smov [#allocation6]   ;;  %s72_s21 = int_to_ptr.vmem [resolvable:$true] %s71_s21 }
  0x16   :  { %v56_v5 = vsel %vm44_vm0, %v55_v3, 0.0  ;;  %s81_s23 = sshll.u32 %s174_s22, 4  ;;  %s121_s24 = scalar_lea.vmem %s72_s21, 16  ;;  %s202_s23 = int_to_ptr.vmem [resolvable:$true] %s81_s23 }
  0x17   :  { %v47_v6 = vadd.f32 %v46_v4, %v45_v2  ;;  %v57_v7 = vrot.slane %v56_v5, 4  ;;  %p122_p8 = scmp.ne.s32.totalorder %s72_s21, %s121_s24  ;;  %s125_s25 = scalar_lea.vmem %s72_s21, 32 }
  0x18   :  { %p126_p9 = scmp.lt.s32.totalorder %s72_s21, %s72_s21  ;;  %p127_p10 = scmp.lt.s32.totalorder %s125_s25, %s121_s24 }
  0x19   :  { %v48_v8 = vrot.slane %v47_v6, 2  ;;  %v58_v9 = vadd.f32 %v57_v7, %v56_v5 }
  0x1a   :  { %p128_p11 = por %p127_p10, %p126_p9 }
  0x1b   :  { %v49_v10 = vadd.f32 %v48_v8, %v47_v6  ;;  %v59_v11 = vrot.slane %v58_v9, 2  ;;  %v43_v14 = vld [vmem:[#allocation5] sm:$0x1]  ;;  %v54_v17 = vld [vmem:[#allocation6] sm:$0x1] }
  0x1c   :  { %p129_p12 = pnand %p128_p11, %p122_p8 }
  0x1d   :  { %v50_v12 = vrot.slane %v49_v10, 1  ;;  %v60_v13 = vadd.f32 %v59_v11, %v58_v9 }
  0x1f   :  { %v51_v15 = vadd.f32 %v50_v12, %v49_v10  ;;  %v61_v16 = vrot.slane %v60_v13, 1 }
  0x21   :  { %v52_v18 = vadd.f32 %v51_v15, %v43_v14  ;;  %v62_v19 = vadd.f32 %v61_v16, %v60_v13 }
  0x23   :  { %53 = vst [vmem:[#allocation5] sm:$0x1] %v52_v18  ;;  %v63_v20 = vadd.f32 %v62_v19, %v54_v17 }
  0x24   :  { %132 = shalt.err (!%p129_p12)
}
  0x25   :  { %s133_s28 = scalar_lea.hbm %s235_s1, 16 }
  0x26   :  { %p134_p13 = scmp.ne.s32.totalorder %s235_s1, %s133_s28  ;;  %p137_p0 = scmp.lt.u32.totalorder %s133_s28, %s235_s1 }
  0x28   :  { %p139_p1 = pnand %p137_p0, %p134_p13 }
  0x2a   :  { %142 = shalt.err (!%p139_p1)
}
  0x2b   :  { %74 = dma.vmem_to_hbm [thread:$0]  %s72_s21, 16, %s235_s1, [#allocation4]   ;;  %64 = vst [vmem:[#allocation6] sm:$0x1] %v63_v20 }
  0x2c   :  { %s143_s7 = scalar_lea.vmem %s202_s23, 16  ;;  %s147_s8 = scalar_lea.vmem %s202_s23, 32 }
  0x2d   :  { %p144_p2 = scmp.ne.s32.totalorder %s202_s23, %s143_s7  ;;  %p148_p3 = scmp.lt.s32.totalorder %s202_s23, %s202_s23 }
  0x2e   :  { %p149_p4 = scmp.lt.s32.totalorder %s147_s8, %s143_s7 }
  0x30   :  { %p150_p5 = por %p149_p4, %p148_p3 }
  0x32   :  { %p151_p6 = pnand %p150_p5, %p144_p2 }
  0x34   :  { %154 = shalt.err (!%p151_p6)
}
  0x35   :  { %s155_s11 = scalar_lea.hbm %s236_s2, 16 }
  0x36   :  { %p156_p7 = scmp.ne.s32.totalorder %s236_s2, %s155_s11  ;;  %p159_p8 = scmp.lt.u32.totalorder %s155_s11, %s236_s2 }
  0x38   :  { %p161_p9 = pnand %p159_p8, %p156_p7 }
  0x3a   :  { %164 = shalt.err (!%p161_p9)
}
  0x3b   :  { %84 = dma.vmem_to_hbm [thread:$0]  %s202_s23, 16, %s236_s2, [#allocation7]  }
  0x3c   :  { %167 = dma.done.wait [#allocation4], 16  }
  0x3d   :  { %168 = vsyncadd [#allocation4], 4294967280 }
  0x3e   :  { %169 = dma.done.wait [#allocation7], 16  }
  0x3f   :  { %170 = vsyncadd [#allocation7], 4294967280 }
  0x40   :  { %91 = vsyncpa [#allocation3], 1 }
  0x41   :  { %92 = vsyncpa [#allocation4], 1 }
  0x42   :  { %93 = vsyncpa [#allocation7], 1 }

</bundles_post_ra>
